<compile_context>
chip_gen: v5e
topology: v5e:2x2
jax: 0.10.0
libtpu: 0.0.40
codegen_flags: <defaults>
</compile_context>

<pallas_src>
import functools

import jax
import jax.numpy as jnp
from jax.experimental import pallas as pl
from jax.experimental.pallas import tpu as pltpu


def _convbank_kernel(kmax, pmax, x_ref, w_in_ref, b_in_ref, w_bank_ref,
                     b_bank_ref, w_out_ref, b_out_ref, o_ref, pad_ref):
    """One batch element (full time axis) per grid step.

    x_ref:      (T, Din)            bf16 VMEM
    w_in_ref:   (Din, H)            bf16
    b_in_ref:   (1, H)              f32
    w_bank_ref: (kmax*H, n_k*C)     bf16  (all conv branches packed, zero-padded)
    b_bank_ref: (1, n_k*C)          f32
    w_out_ref:  (n_k*C, out_pad)    bf16  (out_pad = multiple of 128)
    b_out_ref:  (1, out_pad)        f32
    o_ref:      (T, out_pad)        f32
    pad_ref:    (T + 2*pmax, H)     bf16 scratch (zero halo + hidden interior)
    """
    T = x_ref.shape[0]
    H = w_in_ref.shape[1]

    # Zero only the halo rows of the padded-hidden scratch (2*pmax rows; the
    # interior is overwritten with h every step).
    if pmax > 0:
        pad_ref[0:pmax, :] = jnp.zeros((pmax, H), pad_ref.dtype)
        pad_ref[pmax + T:2 * pmax + T, :] = jnp.zeros((pmax, H), pad_ref.dtype)

    # ---- in_linear + ReLU (bf16 MXU operands, f32 accumulate & elementwise) ----
    h = jnp.dot(x_ref[...], w_in_ref[...], preferred_element_type=jnp.float32)
    h = jnp.maximum(h + b_in_ref[...], 0.0)          # dropout == identity
    pad_ref[pmax:pmax + T, :] = h.astype(pad_ref.dtype)

    # ---- im2col over the largest kernel's taps, single matmul for the bank ----
    im = jnp.concatenate([pad_ref[d:d + T, :] for d in range(kmax)], axis=1)
    conv = jnp.dot(im, w_bank_ref[...], preferred_element_type=jnp.float32)
    conv = jnp.maximum(conv + b_bank_ref[...], 0.0)   # ReLU; dropout == identity

    # ---- out_linear into the 128-lane-padded output slab ----
    out = jnp.dot(conv.astype(w_out_ref.dtype), w_out_ref[...],
                  preferred_element_type=jnp.float32)
    o_ref[...] = out + b_out_ref[...]


def convbank_forward(x, params, kernels, cnn_size):
    """x: (B, T, input_dim) f32.

    params (PyTorch weights, pre-transposed):
      w_in (Din,H), b_in (1,H), w_conv[i] (k_i,H,C), b_conv[i] (1,C),
      w_out (C*n_k, O), b_out (1, O).
    Returns (B, T, O) f32.
    """
    assert len(kernels) > 0
    # PyTorch Conv1d(padding=k//2) with even k changes the output length; this
    # T-length formulation only matches odd kernels.
    assert all(k % 2 == 1 for k in kernels), "only odd kernel sizes supported"

    B, T, Din = x.shape
    H = params["w_in"].shape[1]
    C = cnn_size
    n_k = len(kernels)
    out_dim = params["w_out"].shape[1]
    kmax = max(kernels)
    pmax = kmax // 2
    out_pad = ((out_dim + 127) // 128) * 128          # lane-dense output slab

    # ---- pack the conv bank into one (kmax*H, n_k*C) weight (zeros elsewhere) ----
    w_bank = jnp.zeros((kmax * H, n_k * C), jnp.float32)
    for i, k in enumerate(kernels):
        p = k // 2
        for tap in range(k):
            d = pmax - p + tap                        # tap slot inside kmax window
            w_bank = w_bank.at[d * H:(d + 1) * H, i * C:(i + 1) * C].set(
                params["w_conv"][i][tap])
    b_bank = jnp.concatenate([params["b_conv"][i] for i in range(n_k)], axis=-1)

    # ---- lane-pad out_linear to a multiple of 128 ----
    w_out = jnp.zeros((n_k * C, out_pad), jnp.float32).at[:, :out_dim].set(
        params["w_out"])
    b_out = jnp.zeros((1, out_pad), jnp.float32).at[:, :out_dim].set(
        params["b_out"])

    # bf16 MXU operands (f32 accumulation happens inside the kernel).
    x_bf = x.astype(jnp.bfloat16)
    w_in_bf = params["w_in"].astype(jnp.bfloat16)
    w_bank_bf = w_bank.astype(jnp.bfloat16)
    w_out_bf = w_out.astype(jnp.bfloat16)

    kernel = functools.partial(_convbank_kernel, kmax, pmax)

    flops = 2 * B * T * (Din * H + kmax * H * n_k * C + n_k * C * out_pad)
    bytes_accessed = (B * T * Din * 2 + B * T * out_pad * 4
                      + (Din * H + kmax * H * n_k * C + n_k * C * out_pad) * 2
                      + (H + n_k * C + out_pad) * 4)

    out = pl.pallas_call(
        kernel,
        out_shape=jax.ShapeDtypeStruct((B, T, out_pad), jnp.float32),
        grid=(B,),
        in_specs=[
            pl.BlockSpec((None, T, Din), lambda b: (b, 0, 0)),
            pl.BlockSpec((Din, H), lambda b: (0, 0)),
            pl.BlockSpec((1, H), lambda b: (0, 0)),
            pl.BlockSpec((kmax * H, n_k * C), lambda b: (0, 0)),
            pl.BlockSpec((1, n_k * C), lambda b: (0, 0)),
            pl.BlockSpec((n_k * C, out_pad), lambda b: (0, 0)),
            pl.BlockSpec((1, out_pad), lambda b: (0, 0)),
        ],
        out_specs=pl.BlockSpec((None, T, out_pad), lambda b: (b, 0, 0)),
        scratch_shapes=[pltpu.VMEM((T + 2 * pmax, H), jnp.bfloat16)],
        compiler_params=pltpu.CompilerParams(
            dimension_semantics=("parallel",)),
        cost_estimate=pl.CostEstimate(flops=flops, transcendentals=0,
                                      bytes_accessed=bytes_accessed),
    )(x_bf, w_in_bf, params["b_in"], w_bank_bf, b_bank, w_out_bf, b_out)

    return out[..., :out_dim]


def ref_forward(x, params, kernels):
    """Pure-JAX f32 reference mirroring the PyTorch forward (dropout = identity)."""
    B, T, _ = x.shape
    h = jnp.maximum(x @ params["w_in"] + params["b_in"][0], 0.0)
    feats = []
    for i, k in enumerate(kernels):
        p = k // 2
        hp = jnp.pad(h, ((0, 0), (p, p), (0, 0)))
        w = params["w_conv"][i]                       # (k, H, C)
        acc = jnp.zeros((B, T, w.shape[2]), jnp.float32) + params["b_conv"][i][0]
        for tap in range(k):
            acc = acc + jnp.einsum("bth,hc->btc", hp[:, tap:tap + T], w[tap])
        feats.append(acc)
    hidden = jnp.maximum(jnp.concatenate(feats, axis=-1), 0.0)
    return hidden @ params["w_out"] + params["b_out"][0]


if __name__ == "__main__":
    # ConvBank(input_dim=32, output_class_num=16, kernels=(3,5),
    #          cnn_size=32, hidden_size=32, dropout=0.1)
    B, T = 2, 16
    input_dim, hidden_size, cnn_size, out_classes = 32, 32, 32, 16
    kernels = (3, 5)

    key = jax.random.PRNGKey(0)
    ks = jax.random.split(key, 4 + 2 * len(kernels) + 1)

    params = {
        "w_in": jax.random.normal(ks[0], (input_dim, hidden_size), jnp.float32) * 0.1,
        "b_in": jax.random.normal(ks[1], (1, hidden_size), jnp.float32) * 0.1,
        "w_conv": [],
        "b_conv": [],
        # out_linear: (cnn_size * n_kernels, out_classes)
        "w_out": jax.random.normal(
            ks[2], (cnn_size * len(kernels), out_classes), jnp.float32) * 0.1,
        "b_out": jax.random.normal(ks[3], (1, out_classes), jnp.float32) * 0.1,
    }
    for ki, k in enumerate(kernels):
        # PyTorch Conv1d weight is (C_out, C_in, k); stored here as (k, C_in, C_out)
        params["w_conv"].append(
            jax.random.normal(ks[4 + 2 * ki], (k, hidden_size, cnn_size),
                              jnp.float32) * 0.1)
        params["b_conv"].append(
            jax.random.normal(ks[5 + 2 * ki], (1, cnn_size), jnp.float32) * 0.1)

    x = jax.random.normal(ks[-1], (B, T, input_dim), jnp.float32)

    out = convbank_forward(x, params, kernels, cnn_size)
    out = jax.block_until_ready(out)

    ref = ref_forward(x, params, kernels)
    assert out.shape == (B, T, out_classes)
    # Tolerance accounts for bf16 MXU operands (f32 accumulation) in the kernel
    # vs. the pure-f32 reference.
    assert jnp.allclose(out, ref, atol=3e-2, rtol=3e-2), "mismatch vs reference"

    print("KERNEL_OK")
</pallas_src>

<mosaic_0001>
module attributes {stable_mosaic.version = 11 : i64} {
  func.func @_convbank_kernel(%arg0: i32, %arg1: memref<1x16x32xbf16, #tpu.memory_space<vmem>>, %arg2: memref<32x32xbf16, #tpu.memory_space<vmem>>, %arg3: memref<1x32xf32, #tpu.memory_space<vmem>>, %arg4: memref<160x64xbf16, #tpu.memory_space<vmem>>, %arg5: memref<1x64xf32, #tpu.memory_space<vmem>>, %arg6: memref<64x128xbf16, #tpu.memory_space<vmem>>, %arg7: memref<1x128xf32, #tpu.memory_space<vmem>>, %arg8: memref<1x16x128xf32, #tpu.memory_space<vmem>>, %arg9: memref<20x32xbf16, #tpu.memory_space<vmem>>) attributes {dimension_semantics = [#tpu.dimension_semantics<parallel>], iteration_bounds = array<i64: 2>, scalar_prefetch = 0 : i64, scratch_operands = 1 : i64, tpu.core_type = #tpu.core_type<tc>, window_params = [{transform_indices = @transform_0, window_bounds = array<i64: 1, 16, 32>}, {pipeline_mode = #tpu.pipeline_mode<synchronous>, transform_indices = @transform_1, window_bounds = array<i64: 32, 32>}, {pipeline_mode = #tpu.pipeline_mode<synchronous>, transform_indices = @transform_2, window_bounds = array<i64: 1, 32>}, {pipeline_mode = #tpu.pipeline_mode<synchronous>, transform_indices = @transform_3, window_bounds = array<i64: 160, 64>}, {pipeline_mode = #tpu.pipeline_mode<synchronous>, transform_indices = @transform_4, window_bounds = array<i64: 1, 64>}, {pipeline_mode = #tpu.pipeline_mode<synchronous>, transform_indices = @transform_5, window_bounds = array<i64: 64, 128>}, {pipeline_mode = #tpu.pipeline_mode<synchronous>, transform_indices = @transform_6, window_bounds = array<i64: 1, 128>}, {transform_indices = @transform_7, window_bounds = array<i64: 1, 16, 128>}]} {
    %cst = arith.constant 0.000000e+00 : bf16
    %0 = vector.broadcast %cst : bf16 to vector<2x32xbf16>
    %c0 = arith.constant 0 : index
    %c0_0 = arith.constant 0 : index
    %1 = vector.load %arg9[%c0, %c0_0] : memref<20x32xbf16, #tpu.memory_space<vmem>>, vector<2x32xbf16>
    tpu.vector_store %arg9[%c0, %c0_0], %0 {strides = array<i32>} : memref<20x32xbf16, #tpu.memory_space<vmem>>, vector<2x32xbf16>,
    %cst_1 = arith.constant 0.000000e+00 : bf16
    %2 = vector.broadcast %cst_1 : bf16 to vector<2x32xbf16>
    %c18 = arith.constant 18 : index
    %c0_2 = arith.constant 0 : index
    %3 = vector.load %arg9[%c18, %c0_2] : memref<20x32xbf16, #tpu.memory_space<vmem>>, vector<2x32xbf16>
    tpu.vector_store %arg9[%c18, %c0_2], %2 {strides = array<i32>} : memref<20x32xbf16, #tpu.memory_space<vmem>>, vector<2x32xbf16>,
    %c0_3 = arith.constant 0 : index
    %c0_4 = arith.constant 0 : index
    %c0_5 = arith.constant 0 : index
    %4 = vector.load %arg1[%c0_3, %c0_4, %c0_5] : memref<1x16x32xbf16, #tpu.memory_space<vmem>>, vector<1x16x32xbf16>
    %5 = vector.shape_cast %4 : vector<1x16x32xbf16> to vector<16x32xbf16>
    %c0_6 = arith.constant 0 : index
    %c0_7 = arith.constant 0 : index
    %6 = vector.load %arg2[%c0_6, %c0_7] : memref<32x32xbf16, #tpu.memory_space<vmem>>, vector<32x32xbf16>
    %cst_8 = arith.constant dense<0.000000e+00> : vector<16x32xf32>
    %7 = tpu.matmul %5, %6, %cst_8 {dimension_numbers = #tpu.dot_dimension_numbers<[1], [0], [0], [1], [0, 0, 1, 1], [], []>} : vector<16x32xbf16>, vector<32x32xbf16>, vector<16x32xf32> -> vector<16x32xf32>
    %c0_9 = arith.constant 0 : index
    %c0_10 = arith.constant 0 : index
    %8 = vector.load %arg3[%c0_9, %c0_10] : memref<1x32xf32, #tpu.memory_space<vmem>>, vector<1x32xf32>
    %9 = vector.broadcast %8 : vector<1x32xf32> to vector<16x32xf32>
    %10 = arith.addf %7, %9 : vector<16x32xf32>
    %cst_11 = arith.constant 0.000000e+00 : f32
    %11 = vector.broadcast %cst_11 : f32 to vector<16x32xf32>
    %12 = arith.maximumf %10, %11 : vector<16x32xf32>
    %13 = arith.truncf %12 : vector<16x32xf32> to vector<16x32xbf16>
    %c2 = arith.constant 2 : index
    %c0_12 = arith.constant 0 : index
    %14 = vector.load %arg9[%c2, %c0_12] : memref<20x32xbf16, #tpu.memory_space<vmem>>, vector<16x32xbf16>
    tpu.vector_store %arg9[%c2, %c0_12], %13 {strides = array<i32>} : memref<20x32xbf16, #tpu.memory_space<vmem>>, vector<16x32xbf16>,
    %c0_13 = arith.constant 0 : index
    %c0_14 = arith.constant 0 : index
    %15 = vector.load %arg9[%c0_13, %c0_14] : memref<20x32xbf16, #tpu.memory_space<vmem>>, vector<16x32xbf16>
    %c1 = arith.constant 1 : index
    %c0_15 = arith.constant 0 : index
    %16 = vector.load %arg9[%c1, %c0_15] : memref<20x32xbf16, #tpu.memory_space<vmem>>, vector<16x32xbf16>
    %c2_16 = arith.constant 2 : index
    %c0_17 = arith.constant 0 : index
    %17 = vector.load %arg9[%c2_16, %c0_17] : memref<20x32xbf16, #tpu.memory_space<vmem>>, vector<16x32xbf16>
    %c3 = arith.constant 3 : index
    %c0_18 = arith.constant 0 : index
    %18 = vector.load %arg9[%c3, %c0_18] : memref<20x32xbf16, #tpu.memory_space<vmem>>, vector<16x32xbf16>
    %c4 = arith.constant 4 : index
    %c0_19 = arith.constant 0 : index
    %19 = vector.load %arg9[%c4, %c0_19] : memref<20x32xbf16, #tpu.memory_space<vmem>>, vector<16x32xbf16>
    %20 = tpu.concatenate %15, %16, %17, %18, %19 in 1 : vector<16x32xbf16>, vector<16x32xbf16>, vector<16x32xbf16>, vector<16x32xbf16>, vector<16x32xbf16> -> vector<16x160xbf16>
    %c0_20 = arith.constant 0 : index
    %c0_21 = arith.constant 0 : index
    %21 = vector.load %arg4[%c0_20, %c0_21] : memref<160x64xbf16, #tpu.memory_space<vmem>>, vector<160x64xbf16>
    %cst_22 = arith.constant dense<0.000000e+00> : vector<16x64xf32>
    %22 = tpu.matmul %20, %21, %cst_22 {dimension_numbers = #tpu.dot_dimension_numbers<[1], [0], [0], [1], [0, 0, 1, 1], [], []>} : vector<16x160xbf16>, vector<160x64xbf16>, vector<16x64xf32> -> vector<16x64xf32>
    %c0_23 = arith.constant 0 : index
    %c0_24 = arith.constant 0 : index
    %23 = vector.load %arg5[%c0_23, %c0_24] : memref<1x64xf32, #tpu.memory_space<vmem>>, vector<1x64xf32>
    %24 = vector.broadcast %23 : vector<1x64xf32> to vector<16x64xf32>
    %25 = arith.addf %22, %24 : vector<16x64xf32>
    %cst_25 = arith.constant 0.000000e+00 : f32
    %26 = vector.broadcast %cst_25 : f32 to vector<16x64xf32>
    %27 = arith.maximumf %25, %26 : vector<16x64xf32>
    %28 = arith.truncf %27 : vector<16x64xf32> to vector<16x64xbf16>
    %c0_26 = arith.constant 0 : index
    %c0_27 = arith.constant 0 : index
    %29 = vector.load %arg6[%c0_26, %c0_27] : memref<64x128xbf16, #tpu.memory_space<vmem>>, vector<64x128xbf16>
    %cst_28 = arith.constant dense<0.000000e+00> : vector<16x128xf32>
    %30 = tpu.matmul %28, %29, %cst_28 {dimension_numbers = #tpu.dot_dimension_numbers<[1], [0], [0], [1], [0, 0, 1, 1], [], []>} : vector<16x64xbf16>, vector<64x128xbf16>, vector<16x128xf32> -> vector<16x128xf32>
    %c0_29 = arith.constant 0 : index
    %c0_30 = arith.constant 0 : index
    %31 = vector.load %arg7[%c0_29, %c0_30] : memref<1x128xf32, #tpu.memory_space<vmem>>, vector<1x128xf32>
    %32 = vector.broadcast %31 : vector<1x128xf32> to vector<16x128xf32>
    %33 = arith.addf %30, %32 : vector<16x128xf32>
    %c0_31 = arith.constant 0 : index
    %c0_32 = arith.constant 0 : index
    %c0_33 = arith.constant 0 : index
    %34 = vector.load %arg8[%c0_31, %c0_32, %c0_33] : memref<1x16x128xf32, #tpu.memory_space<vmem>>, vector<1x16x128xf32>
    %35 = vector.shape_cast %34 : vector<1x16x128xf32> to vector<16x128xf32>
    %36 = vector.shape_cast %33 : vector<16x128xf32> to vector<1x16x128xf32>
    tpu.vector_store %arg8[%c0_31, %c0_32, %c0_33], %36 {strides = array<i32>} : memref<1x16x128xf32, #tpu.memory_space<vmem>>, vector<1x16x128xf32>,
    return
  }
  func.func @transform_0(%arg0: i32) -> (i32, i32, i32) {
    %c0_i32 = arith.constant 0 : i32
    %c0_i32_0 = arith.constant 0 : i32
    %c0_i32_1 = arith.constant 0 : i32
    return %arg0, %c0_i32, %c0_i32_0 : i32, i32, i32
  }
  func.func @transform_1(%arg0: i32) -> (i32, i32) {
    %c0_i32 = arith.constant 0 : i32
    %c0_i32_0 = arith.constant 0 : i32
    %c0_i32_1 = arith.constant 0 : i32
    return %c0_i32, %c0_i32_0 : i32, i32
  }
  func.func @transform_2(%arg0: i32) -> (i32, i32) {
    %c0_i32 = arith.constant 0 : i32
    %c0_i32_0 = arith.constant 0 : i32
    %c0_i32_1 = arith.constant 0 : i32
    return %c0_i32, %c0_i32_0 : i32, i32
  }
  func.func @transform_3(%arg0: i32) -> (i32, i32) {
    %c0_i32 = arith.constant 0 : i32
    %c0_i32_0 = arith.constant 0 : i32
    %c0_i32_1 = arith.constant 0 : i32
    return %c0_i32, %c0_i32_0 : i32, i32
  }
  func.func @transform_4(%arg0: i32) -> (i32, i32) {
    %c0_i32 = arith.constant 0 : i32
    %c0_i32_0 = arith.constant 0 : i32
    %c0_i32_1 = arith.constant 0 : i32
    return %c0_i32, %c0_i32_0 : i32, i32
  }
  func.func @transform_5(%arg0: i32) -> (i32, i32) {
    %c0_i32 = arith.constant 0 : i32
    %c0_i32_0 = arith.constant 0 : i32
    %c0_i32_1 = arith.constant 0 : i32
    return %c0_i32, %c0_i32_0 : i32, i32
  }
  func.func @transform_6(%arg0: i32) -> (i32, i32) {
    %c0_i32 = arith.constant 0 : i32
    %c0_i32_0 = arith.constant 0 : i32
    %c0_i32_1 = arith.constant 0 : i32
    return %c0_i32, %c0_i32_0 : i32, i32
  }
  func.func @transform_7(%arg0: i32) -> (i32, i32, i32) {
    %c0_i32 = arith.constant 0 : i32
    %c0_i32_0 = arith.constant 0 : i32
    %c0_i32_1 = arith.constant 0 : i32
    return %arg0, %c0_i32, %c0_i32_0 : i32, i32, i32
  }
}

</mosaic_0001>

<bundles_post_ra>
// kernel: tpu_custom_call.1
= control target key start
LH: loop header
LB: loop body
LE: loop exit
PB: predicated region body
PF: predicated region fallthrough
CT: control target
= control target key end

     0   :  { %12 = vsyncpa [#allocation4], 0  ;;  %s1091_s0 = inlined_call_operand.vmem [shape: bf16[2,16,32], index: 0, kind: input, shape index: {}]   ;;  %s1092_s1 = inlined_call_operand.vmem [shape: bf16[32,32], index: 1, kind: input, shape index: {}]   ;;  %s1093_s2 = inlined_call_operand.vmem [shape: f32[1,32], index: 2, kind: input, shape index: {}]   ;;  %s1094_s3 = inlined_call_operand.vmem [shape: bf16[160,64], index: 3, kind: input, shape index: {}]   ;;  %s1095_s4 = inlined_call_operand.vmem [shape: f32[1,64], index: 4, kind: input, shape index: {}]   ;;  %s1096_s5 = inlined_call_operand.vmem [shape: bf16[64,128], index: 5, kind: input, shape index: {}]   ;;  %s1097_s6 = inlined_call_operand.vmem [shape: f32[1,128], index: 6, kind: input, shape index: {}]   ;;  %s1098_s7 = inlined_call_operand.hbm [shape: f32[2,16,128], index: 7, kind: output, shape index: {}]  }
   0x1   :  { %14 = vsyncpa [#allocation4 + $0x1], 0  ;;  %s941_s24 = smov 0   ;;  %s943_s25 = smov 0  }
   0x2   :  { %s945_s26 = smov 0   ;;  %s947_s27 = smov 0  }
   0x3 LB: > { %s962_s28 = sadd.s32 4294967295, %s893_s27   ;;  %s677_s29 = sadd.s32 4294967294, %s893_s27   ;;  %s893_s27 = sphi %s947_s27, %s1104_s27   ;;  %s889_s26 = sphi %s945_s26, %s1103_s26   ;;  %s885_s25 = sphi %s943_s25, %s1102_s25   ;;  %s881_s24 = sphi %s941_s24, %s1101_s24  }
   0x4   : > { %s966_s30 = sadd.s32 1, %s893_s27   ;;  %s179_s8 = sadd.s32 1, %s889_s26 }
   0x5   : > { %s176_s9 = ssub.s32 %s893_s27, %s966_s30  ;;  %p189_p0 = scmp.ne.s32.totalorder %s889_s26, %s885_s25 }
   0x6   : > { %p177_p1 = scmp.eq.s32.totalorder %s176_s9, 0  ;;  %p190_p2 = scmp.eq.s32.totalorder %s962_s28, 1 }
   0x7   : > { %p195_p3 = scmp.ne.s32.totalorder %s885_s25, %s881_s24  ;;  %p196_p4 = scmp.eq.s32.totalorder %s677_s29, 1 }
   0x8   : > { %s977_s10 = scalar_select %p177_p1, %s889_s26, %s179_s8  }
   0x9   : > { %p979_p5 = por %p190_p2, %p189_p0  ;;  %p983_p6 = por %p196_p4, %p195_p3 }
   0xa   : > { %p680_p7 = scmp.ge.s32.totalorder %s893_s27, 1  ;;  %p240_p8 = scmp.lt.s32.totalorder %s893_s27, 3 }
   0xc   : > { %p241_p9 = pnand %p680_p7, %p240_p8 }
   0xd   : > { %p272_p10 = scmp.lt.s32.totalorder (!%p241_p9), %s962_s28, 1  ;;  %s896_s9 = smov (!%p241_p9), 32  }
   0xe   : > { %244 = sbr.rel (%p241_p9) target bundleno = 602 (0x25a), region = 48  ;;  %s897_s13 = smov (!%p241_p9), 96  }
   0xf   : > { %s898_s14 = smov (!%p241_p9), 64   ;;  %s269_s15 = sand.u32 (!%p241_p9), 1, %s885_s25  }
  0x10   : > { %s681_s16 = sshll.u32 (!%p241_p9), %s269_s15, 4  ;;  %s778_s19 = sshll.u32 (!%p241_p9), %s962_s28, 4 }
  0x11   : > { %s271_s20 = scalar_lea.vmem (!%p241_p9), [#allocation3], %s681_s16  ;;  %s611_s23 = scalar_lea.hbm (!%p241_p9), %s1098_s7, %s778_s19 }
  0x12   : > { %s612_s29 = sshll.u32 (!%p241_p9), %s271_s20, 4  ;;  %s614_s8 = sshll.u32 (!%p241_p9), %s611_s23, 4  ;;  %s613_s29 = int_to_ptr.vmem [resolvable:$true] %s612_s29  ;;  %s615_s8 = int_to_ptr.hbm [resolvable:$true] %s614_s8 }
  0x13   : > { %v763_v0 = vld [vmem:[%s1092_s1 + $0x8] sm:$0xff]  ;;  %v762_v1 = vld [vmem:[%s1092_s1] sm:$0xff]  ;;  %s273_s17 = scalar_select %p272_p10, %s962_s28, 1  ;;  %vm309_vm0 = vcmask 261120   ;;  %vm278_vm1 = vcmask 253952   ;;  %vm280_vm2 = vcmask 254977  }
  0x14   : > { %319 = vmatpush.bf16.msra.mxu0 %v763_v0  ;;  %v895_v3 = vmov 0   ;;  %v773_v4 = vld [vmem:[%s1094_s3 + $0x48] sm:$0xff]  ;;  %v772_v5 = vld [vmem:[%s1094_s3 + $0x40] sm:$0xff]  ;;  %vm344_vm3 = vcmask 257025   ;;  %vm333_vm4 = vcmask 1040384   ;;  %vm334_vm5 = vcmask 1044484  }
  0x15   : > { %s760_s18 = sshll.u32 %s273_s17, 3  ;;  %279 = vst.msk [vmem:[#allocation2] sm:$0x1] %vm278_vm1, %v895_v3  ;;  %533 = vmatpush.bf16.msra.mxu2 %v773_v4  ;;  %v828_v6 = vld [vmem:[%s1093_s2] ss:$0 sm:$0xff]  ;;  %v771_v15 = vld [vmem:[%s1094_s3 + $0x38] sm:$0xff]  ;;  %vm335_vm6 = vmor %vm333_vm4, %vm334_vm5 }
  0x16   : > { %s276_s21 = scalar_lea.vmem %s1091_s0, %s760_s18  ;;  %281 = vst.msk [vmem:[#allocation2 + $0x8] sm:$0x2] %vm280_vm2, %v895_v3  ;;  %513 = vmatpush.bf16.msra.mxu1 %v771_v15  ;;  %v770_v17 = vld [vmem:[%s1094_s3 + $0x30] sm:$0xff]  ;;  %vm346_vm7 = vcmask 257024   ;;  %v769_v22 = vld [vmem:[%s1094_s3 + $0x28] sm:$0xff]  ;;  %v768_v23 = vld [vmem:[%s1094_s3 + $0x20] sm:$0xff] }
  0x17   : > { %v761_v2 = vld [vmem:[%s276_s21] sm:$0xff]  ;;  %v767_v33 = vld [vmem:[%s1094_s3 + $0x18] sm:$0xff]  ;;  %vm413_vm8 = vcmask 1045504   ;;  %v766_v45 = vld [vmem:[%s1094_s3 + $0x10] sm:$0xff]  ;;  %vm363_vm9 = vsmask.f32 7424 }
  0x18   : > { %320 = vmatpush.bf16.msra.mxu0 %v762_v1  ;;  %vm390_vm10 = vsmask.f32 6400  ;;  %vm381_vm11 = vcmask 1046528   ;;  %v765_v0 = vld [vmem:[%s1094_s3 + $0x8] sm:$0xff]  ;;  %v764_v1 = vld [vmem:[%s1094_s3] sm:$0xff]  ;;  %vm419_vm12 = vcmask 523264  }
  0x19   : > { %534 = vmatpush.bf16.msra.mxu2 %v772_v5  ;;  %vm422_vm13 = vcmask 785408   ;;  %s851_s17 = scalar_lea.hbm %s1098_s7, 32 }
  0x1a   : > { %514 = vmatpush.bf16.msra.mxu1 %v770_v17 }
  0x1b   : > { %696 = vmatmul.msk.bf16.vlgmr.msra.gmra.mxu0 %vm309_vm0, %v761_v2 }
  0x1e   : > { %515 = vmatpush.bf16.msra.mxu1 %v769_v22 }
  0x22   : > { %516 = vmatpush.bf16.msra.mxu1 %v768_v23 }
  0x26   : > { %517 = vmatpush.bf16.msra.mxu1 %v767_v33 }
  0x2a   : > { %518 = vmatpush.bf16.msra.mxu1 %v766_v45 }
  0x2e   : > { %519 = vmatpush.bf16.msra.mxu1 %v765_v0 }
  0x32   : > { %520 = vmatpush.bf16.msra.mxu1 %v764_v1 }
  0x98   : > { %v322_v7 = vpop.f32.mrf.mxu0 }
  0x99   : > { %v323_v8 = vadd.f32 %v828_v6, %v322_v7 }
  0x9b   : > { %v327_v9 = vmax.f32 %v323_v8, 0.0  ;;  %v777_v8 = vld [vmem:[%s1096_s5 + $0x18] sm:$0xff] }
  0x9c   : > { %587 = vmatpush.bf16.msra.mxu3 %v777_v8 }
  0x9d   : > { %v329_v10 = vpack.c.bf16 %v327_v9, %v327_v9  ;;  %v776_v9 = vld [vmem:[%s1096_s5 + $0x10] sm:$0xff] }
  0x9f   : > { %v336_v11 = vrot.slane %v329_v10, 7  ;;  %v775_v10 = vld [vmem:[%s1096_s5 + $0x8] sm:$0xff] }
  0xa0   : > { %v324_v12 = vpop.f32.mrf.mxu0  ;;  %588 = vmatpush.bf16.msra.mxu3 %v776_v9 }
  0xa1   : > { %345 = vst.msk [vmem:[#allocation2] sm:$0xe] %vm344_vm3, %v336_v11  ;;  %v325_v13 = vadd.f32 %v828_v6, %v324_v12  ;;  %v337_v18 = vrot.slane %v336_v11, 4  ;;  %v774_v11 = vld [vmem:[%s1096_s5] sm:$0xff] }
  0xa3   : > { %v328_v14 = vmax.f32 %v325_v13, 0.0 }
  0xa4   : > { %589 = vmatpush.bf16.msra.mxu3 %v775_v10 }
  0xa5   : > { %v330_v16 = vpack.c.bf16 %v328_v14, %v328_v14  ;;  %v829_v14 = vld [vmem:[%s1095_s4] ss:$0 sm:$0xff] }
  0xa7   : > { %v338_v19 = vrot.slane %v330_v16, 7 }
  0xa8   : > { %v352_v24 = vld [vmem:[#allocation2] sm:$0xe]  ;;  %590 = vmatpush.bf16.msra.mxu3 %v774_v11 }
  0xa9   : > { %v339_v20 = vsel %vm335_vm6, %v337_v18, %v338_v19  ;;  %v340_v21 = vrot.slane %v338_v19, 4  ;;  %v354_v25 = vld [vmem:[#allocation2] sm:$0xc]  ;;  %v379_v29 = vunpack.c.l.b16 %v352_v24  ;;  %v830_v24 = vld [vmem:[%s1097_s6] ss:$0 sm:$0xff] }
  0xaa   : > { %347 = vst.msk [vmem:[#allocation2 + $0x4] sm:$0xf] %vm346_vm7, %v339_v20  ;;  %v411_v30 = vunpack.c.l.b16 %v354_v25 }
  0xab   : > { %348 = vst.msk [vmem:[#allocation2 + $0x8] sm:$0x1] %vm278_vm1, %v340_v21 }
  0xb1   : > { %v780_v26 = vld [vmem:[#allocation2] sm:$0xff]  }
  0xb2   : > { %v782_v27 = vunpack.c.h.b16 %v780_v26  ;;  %v353_v28 = vld [vmem:[#allocation2 + $0x8] sm:$0x3]  ;;  %v367_v32 = vshll.u32 %v780_v26, 16  ;;  %v365_v42 = vshrl.u32 %v780_v26, 16 }
  0xb3   : > { %v351_v31 = vld [vmem:[#allocation2 + $0x8] sm:$0x1]  ;;  %v388_v34 = vunpack.c.l.b16 %v353_v28 }
  0xb4   : > { %v361_v35 = vunpack.c.l.b16 %v351_v31  ;;  %v380_v36 = vpack.c.b16 %v782_v27, %v379_v29  ;;  %v412_v37 = vpack.c.b16 %v782_v27, %v411_v30  ;;  %v369_v38 = vrot.slane %v367_v32, 1 }
  0xb5   : > { %v389_v39 = vpack.c.b16 %v388_v34, %v388_v34 }
  0xb6   : > { %v362_v40 = vpack.c.b16 %v361_v35, %v361_v35  ;;  %v414_v41 = vrot.slane %v412_v37, 2  ;;  %v392_v43 = vshrl.u32 %v380_v36, 16  ;;  %v395_v44 = vshll.u32 %v380_v36, 16 }
  0xb7   : > { %v415_v46 = vrot.slane %v389_v39, 2  ;;  %v400_v48 = vshrl.u32 %v389_v39, 16  ;;  %v403_v49 = vshll.u32 %v389_v39, 16  ;;  %v370_v50 = vor.u32 %v369_v38, %v365_v42 }
  0xb8   : > { %v372_v47 = vshll.u32 %v362_v40, 16  ;;  %v394_v51 = vrot.slane %v392_v43, 1  ;;  %v397_v52 = vrot.slane %v395_v44, 2  ;;  %v382_v61 = vrot.slane %v380_v36, 1 }
  0xb9   : > { %v416_v53 = vsel %vm413_vm8, %v414_v41, %v415_v46  ;;  %v402_v55 = vrot.slane %v400_v48, 1  ;;  %v405_v56 = vrot.slane %v403_v49, 2  ;;  %v383_v62 = vrot.slane %v362_v40, 1 }
  0xba   : > { %v374_v54 = vrot.slane %v372_v47, 1  ;;  %737 = vmatmul.msk.bf16.vlgmr.msra.gmra.mxu2 %vm309_vm0, %v416_v53  ;;  %v398_v57 = vor.u32 %v397_v52, %v394_v51 }
  0xbb   : > { %v406_v59 = vor.u32 %v405_v56, %v402_v55  ;;  %v384_v63 = vsel %vm381_vm11, %v382_v61, %v383_v62 }
  0xbc   : > { %v375_v58 = vsel %vm363_vm9, %v370_v50, %v374_v54 }
  0xbd   : > { %376 = vrot.lane.b32.xlu0 %v375_v58, %s896_s9  ;;  %v407_v60 = vsel %vm390_vm10, %v398_v57, %v406_v59  ;;  %s600_s9 = scalar_lea.sflag [#allocation4], %s269_s15 }
  0xbe   : > { %408 = vrot.lane.b32.xlu1 %v407_v60, %s897_s13  ;;  %s845_s13 = sshra.s32 %s615_s8, 4  ;;  %s846_s13 = int_to_ptr.hbm [resolvable:$true] %s845_s13 }
  0xbf   : > { %p852_p0 = scmp.lt.s32.totalorder %s846_s13, %s1098_s7 }
  0xc5   : > { %385 = vrot.lane.b32.xlu0 %v384_v63, %s898_s14  ;;  %s847_s14 = scalar_lea.hbm %s846_s13, 16 }
  0xc6   : > { %p848_p11 = scmp.ne.s32.totalorder %s846_s13, %s847_s14  ;;  %p853_p1 = scmp.lt.s32.totalorder %s851_s17, %s847_s14 }
  0xc8   : > { %p849_p12 = pnand %p848_p11, %p979_p5  ;;  %p854_p2 = por %p853_p1, %p852_p0 }
  0xca   : > { %p850_p13 = pneg %p849_p12 }
  0xcc   : > { %p855_p3 = pnand %p854_p2, %p850_p13 }
 0x12f   : > { %v377_v2 = vpop.permute.xlu0 %376 }
 0x130   : > { %v418_v3 = vsel %vm309_vm0, %v780_v26, %v377_v2  ;;  %v409_v5 = vpop.permute.xlu1 %408 }
 0x137   : > { %v386_v4 = vpop.permute.xlu0 %385 }
 0x138   : > { %v421_v6 = vsel %vm419_vm12, %v418_v3, %v386_v4 }
 0x139   : > { %v424_v7 = vsel %vm422_vm13, %v421_v6, %v409_v5 }
 0x13a   : > { %521 = vmatmul.bf16.vlgmr.msra.gmra.mxu1 %v424_v7 }
 0x13d   : > { %v536_v12 = vpop.f32.mrf.mxu2 }
 0x145   : > { %v538_v19 = vpop.f32.mrf.mxu2 }
 0x1b7   : > { %v522_v13 = vpop.f32.mrf.mxu1 }
 0x1b8   : > { %v523_v15 = vadd.f32 %v829_v14, %v522_v13 }
 0x1ba   : > { %v537_v17 = vadd.f32 %v536_v12, %v523_v15 }
 0x1bc   : > { %v541_v21 = vmax.f32 %v537_v17, 0.0 }
 0x1bf   : > { %v524_v16 = vpop.f32.mrf.mxu1 }
 0x1c0   : > { %v525_v18 = vadd.f32 %v829_v14, %v524_v16 }
 0x1c2   : > { %v539_v20 = vadd.f32 %v538_v19, %v525_v18 }
 0x1c4   : > { %v542_v22 = vmax.f32 %v539_v20, 0.0 }
 0x1c6   : > { %v543_v23 = vpack.c.bf16 %v542_v22, %v541_v21 }
 0x1c8   : > { %754 = vmatmul.msk.bf16.vlgmr.msra.gmra.mxu3 %vm419_vm12, %v543_v23 }
 0x24b   : > { %v592_v25 = vpop.f32.mrf.mxu3 }
 0x24c   : > { %v593_v26 = vadd.f32 %v830_v24, %v592_v25 }
 0x24e   : > { %597 = vst [vmem:[%s271_s20] sm:$0xff] %v593_v26 }
 0x253   : > { %v594_v27 = vpop.f32.mrf.mxu3 }
 0x254   : > { %v595_v28 = vadd.f32 %v830_v24, %v594_v27 }
 0x256   : > { %598 = vst [vmem:[%s271_s20 + $0x8] sm:$0xff] %v595_v28 }
 0x257   : > { %858 = shalt.err (!%p855_p3)
}
 0x258   : > { %s899_s15 = smov 128   ;;  %s900_s20 = smov 8  }
 0x259   : > { %783 = dma.vmem_to_hbm [thread:$0]  (%p979_p5), %s613_s29, 256, %s615_s8, %s600_s9, %s899_s15, %s899_s15, %s900_s20  }
 0x25a PF: > { %p789_p4 = scmp.ge.s32.totalorder %s893_s27, 2  ;;  %s629_s21 = sand.u32 1, %s881_s24  }
 0x25b   : > { %s630_s22 = scalar_lea.sflag [#allocation4], %s629_s21 }
 0x25c   : > { %p786_p7 = pnand %p789_p4, %p983_p6 }
 0x25e   : > { %p787_p8 = pneg %p786_p7 }
 0x260   : > { %876 = dma.done.wait (%p787_p8), %s630_s22, 256  }
 0x261   : > { %878 = vsyncadd (%p787_p8), %s630_s22, 4294967040  ;;  %p17_p9 = scmp.ge.s32.totalorder %s966_s30, 4   ;;  %s1101_s24 = smov %s885_s25 }
 0x262   : > { %s1102_s25 = smov %s889_s26  ;;  %s1103_s26 = smov %s977_s10 }
 0x263   : > { %s1104_s27 = smov %s966_s30  ;;  %19 = sbr.rel (!%p17_p9) target bundleno = 3 (0x3), region = 83 }
 0x268   :  { %636 = vsyncpa [#allocation4], 1 }
 0x269   :  { %638 = vsyncpa [#allocation4 + $0x1], 1 }

</bundles_post_ra>
